<compile_context>
chip_gen: v7x
topology: tpu7x:2x2x1
jax: 0.10.0
libtpu: 0.0.40
codegen_flags: <defaults>
</compile_context>

<pallas_src>
import functools

import jax
import jax.numpy as jnp
import numpy as np
from jax import lax
from jax.experimental import pallas as pl
from jax.experimental.pallas import tpu as pltpu


def _knn_wrmf_kernel(cum_hi_ref, dpl_ref, u_ref, samp_ref, pout_ref, *,
                     id_bytes):
    u = u_ref[...]                       # (R, Kp) uniforms
    hi = cum_hi_ref[...]                 # (R, M)  cum with +inf sentinels
    dpl = dpl_ref[...]                   # (R, P, M) telescoped bf16 byte planes

    # Monotone step mask of the bisect: first True along m == bisect_left idx.
    # Single compare; converted to bf16 exactly once (0/1 values are exact).
    c = (u[:, None, :] <= hi[:, :, None]).astype(jnp.bfloat16)     # (R, M, Kp)

    # Batched MXU gather: planes were telescoped along m in the wrapper, so
    # sum_m dpl[p,m] * c[m,k] == plane[p, bisect_idx(k)] bit-exactly
    # (integer byte differences |.|<=255 are exact in bf16, f32 accumulation).
    res = jnp.einsum("rpm,rmk->rpk", dpl, c,
                     preferred_element_type=jnp.float32)            # (R, P, Kp)
    b = res.astype(jnp.int32)            # exact small integers (byte planes)

    if id_bytes == 2:
        samp = b[:, 0] | (b[:, 1] << 8)
        o = 2
    else:
        samp = b[:, 0] | (b[:, 1] << 8) | (b[:, 2] << 16) | (b[:, 3] << 24)
        o = 4
    pbits = (b[:, o] | (b[:, o + 1] << 8) |
             (b[:, o + 2] << 16) | (b[:, o + 3] << 24))

    # One unmasked full-tile store per output (lane-dense, no vst.msk).
    samp_ref[...] = samp
    pout_ref[...] = pbits


def knn_wrmf_sample(trg_seq, k, user, *, knn_results, user_knn_probs,
                    user_knn_cum_probs, uniforms, num_nearest=100,
                    exclude_visited=False, row_block=64):
    """Forward pass of KNNWRMFSampler. Returns (neg_samples int32, probs f32)."""
    # TODO(synk): exclude_visited=True (rejection resampling against the
    # Python-set user_visited_locs) has no clean Pallas equivalent.
    assert not exclude_visited
    trg_seq = jnp.asarray(trg_seq)
    T = int(trg_seq.shape[0])
    trg_loc = trg_seq[:, 1].astype(jnp.int32)

    knn_results = jnp.asarray(knn_results)
    user_knn_probs = jnp.asarray(user_knn_probs)
    user_knn_cum_probs = jnp.asarray(user_knn_cum_probs)

    # Per-check-in table lookups (the module's host-side fancy indexing).
    # TODO(synk): for large T, move these gathers in-kernel via scalar-prefetched
    # trg_loc + Element-row BlockSpecs on the HBM-resident tables to avoid the
    # extra (T, num_nearest) HBM round trip.
    nearby = knn_results[trg_loc - 1, :num_nearest].astype(jnp.int32)
    prob = user_knn_probs[user - 1][trg_loc, :num_nearest].astype(jnp.float32)
    cum = user_knn_cum_probs[user - 1][trg_loc, :num_nearest].astype(jnp.float32)

    LANE = 128
    H = num_nearest - 1                       # bisect_left hi bound
    M = LANE * pl.cdiv(num_nearest, LANE)     # candidate lanes (padded)
    Kp = LANE * pl.cdiv(k, LANE)              # sample lanes (padded)
    rb = min(row_block, 8 * pl.cdiv(T, 8))    # rows per grid step
    Tp = rb * pl.cdiv(T, rb)
    pad_m = M - num_nearest

    # cum_hi[j] = cum[j] for j < H else +inf; the first j with u <= cum_hi[j]
    # is exactly bisect_left(cum, u, hi=H).
    inf = jnp.float32(jnp.inf)
    lane_idx = jnp.arange(M)[None, :]
    cum_hi = jnp.pad(cum, ((0, 0), (0, pad_m)), constant_values=float("inf"))
    cum_hi = jnp.where(lane_idx >= H, inf, cum_hi)

    # Byte planes (every value <= 255 -> exact bf16): id bytes then the 4 bytes
    # of the f32 probability's bit pattern.  Use 2 id bytes when ids fit.
    near_tab = jnp.pad(nearby, ((0, 0), (0, pad_m)))
    prob_bits = lax.bitcast_convert_type(
        jnp.pad(prob, ((0, 0), (0, pad_m))), jnp.int32)
    try:
        id_max = int(jax.device_get(jnp.max(nearby)))
        id_min = int(jax.device_get(jnp.min(nearby)))
        id_bytes = 2 if (id_min >= 0 and id_max <= 0xFFFF) else 4
    except Exception:   # traced (e.g. under jit) -> be conservative
        id_bytes = 4
    P = id_bytes + 4

    planes = [(near_tab >> (8 * b)) & 0xFF for b in range(id_bytes)]
    planes += [(prob_bits >> (8 * b)) & 0xFF for b in range(4)]
    planes = jnp.stack(planes, axis=1).astype(jnp.float32)        # (T, P, M)
    # Telescope along the candidate axis: since the in-kernel mask c is a
    # monotone step along m, sum_{m} dpl[m]*c[m] == planes[first_true_idx].
    dpl = (planes - jnp.pad(planes[:, :, 1:], ((0, 0), (0, 0), (0, 1)))
           ).astype(jnp.bfloat16)                                 # (T, P, M)

    u = jnp.asarray(uniforms, jnp.float32)
    assert u.shape == (T, k)
    u = jnp.pad(u, ((0, Tp - T), (0, Kp - k)))
    cum_hi = jnp.pad(cum_hi, ((0, Tp - T), (0, 0)))
    dpl = jnp.pad(dpl, ((0, Tp - T), (0, 0), (0, 0)))

    kernel = functools.partial(_knn_wrmf_kernel, id_bytes=id_bytes)
    out_spec = pl.BlockSpec((rb, Kp), lambda i: (i, 0))

    samp, pbits_out = pl.pallas_call(
        kernel,
        out_shape=(jax.ShapeDtypeStruct((Tp, Kp), jnp.int32),
                   jax.ShapeDtypeStruct((Tp, Kp), jnp.int32)),
        grid_spec=pltpu.PrefetchScalarGridSpec(
            num_scalar_prefetch=0,
            grid=(Tp // rb,),
            in_specs=[pl.BlockSpec((rb, M), lambda i: (i, 0)),
                      pl.BlockSpec((rb, P, M), lambda i: (i, 0, 0)),
                      pl.BlockSpec((rb, Kp), lambda i: (i, 0))],
            out_specs=[out_spec, out_spec]),
        compiler_params=pltpu.CompilerParams(
            dimension_semantics=("parallel",),
            vmem_limit_bytes=32 * 1024 * 1024),
    )(cum_hi, dpl, u)

    samples = samp[:T, :k]
    probs = lax.bitcast_convert_type(pbits_out[:T, :k], jnp.float32)
    # TODO(synk): torch returns int64 sample ids; int32 emitted here.
    return samples, probs


if __name__ == "__main__":
    T, k = 8, 128
    n_loc, n_user, num_nearest = 500, 3, 100
    user = 2

    ks = jax.random.split(jax.random.PRNGKey(0), 5)
    knn_results = jax.random.randint(ks[0], (n_loc, num_nearest), 1, n_loc + 1,
                                     dtype=jnp.int32)
    raw = jax.random.uniform(ks[1], (n_user, n_loc + 1, num_nearest),
                             jnp.float32) + 0.05
    user_knn_probs = raw / jnp.sum(raw, axis=-1, keepdims=True)
    user_knn_cum_probs = jnp.cumsum(user_knn_probs, axis=-1)
    trg_seq = jnp.stack(
        [jax.random.randint(ks[2], (T,), 1, n_user + 1, dtype=jnp.int32),
         jax.random.randint(ks[3], (T,), 1, n_loc + 1, dtype=jnp.int32)], axis=1)
    uniforms = jax.random.uniform(ks[4], (T, k), jnp.float32)

    samples, probs = knn_wrmf_sample(
        trg_seq, k, user,
        knn_results=knn_results,
        user_knn_probs=user_knn_probs,
        user_knn_cum_probs=user_knn_cum_probs,
        uniforms=uniforms,
        num_nearest=num_nearest)
    jax.block_until_ready((samples, probs))

    # Pure numpy reference of the torch forward (same uniforms).
    trg_loc_np = np.asarray(trg_seq)[:, 1]
    nearby_np = np.asarray(knn_results)[trg_loc_np - 1, :num_nearest]
    prob_np = np.asarray(user_knn_probs)[user - 1][trg_loc_np, :num_nearest]
    cum_np = np.asarray(user_knn_cum_probs)[user - 1][trg_loc_np, :num_nearest]
    u_np = np.asarray(uniforms)
    ref_samples = np.zeros((T, k), np.int32)
    ref_probs = np.zeros((T, k), np.float32)
    for t in range(T):
        idx = np.searchsorted(cum_np[t, :num_nearest - 1], u_np[t], side="left")
        ref_samples[t] = nearby_np[t, idx]
        ref_probs[t] = prob_np[t, idx]

    assert samples.shape == (T, k) and samples.dtype == jnp.int32
    assert probs.shape == (T, k) and probs.dtype == jnp.float32
    assert np.array_equal(np.asarray(samples), ref_samples)
    assert np.array_equal(np.asarray(probs), ref_probs)
    print("KERNEL_OK")
</pallas_src>

<mosaic_0001>
module attributes {stable_mosaic.version = 11 : i64} {
  func.func @_knn_wrmf_kernel(%arg0: i32, %arg1: memref<8x128xf32, #tpu.memory_space<vmem>>, %arg2: memref<8x6x128xbf16, #tpu.memory_space<vmem>>, %arg3: memref<8x128xf32, #tpu.memory_space<vmem>>, %arg4: memref<8x128xi32, #tpu.memory_space<vmem>>, %arg5: memref<8x128xi32, #tpu.memory_space<vmem>>) attributes {dimension_semantics = [#tpu.dimension_semantics<parallel>], iteration_bounds = array<i64: 1>, scalar_prefetch = 0 : i64, scratch_operands = 0 : i64, tpu.core_type = #tpu.core_type<tc>, window_params = [{transform_indices = @transform_0, window_bounds = array<i64: 8, 128>}, {transform_indices = @transform_1, window_bounds = array<i64: 8, 6, 128>}, {transform_indices = @transform_2, window_bounds = array<i64: 8, 128>}, {transform_indices = @transform_3, window_bounds = array<i64: 8, 128>}, {transform_indices = @transform_4, window_bounds = array<i64: 8, 128>}]} {
    %c0 = arith.constant 0 : index
    %c0_0 = arith.constant 0 : index
    %0 = vector.load %arg3[%c0, %c0_0] : memref<8x128xf32, #tpu.memory_space<vmem>>, vector<8x128xf32>
    %c0_1 = arith.constant 0 : index
    %c0_2 = arith.constant 0 : index
    %1 = vector.load %arg1[%c0_1, %c0_2] : memref<8x128xf32, #tpu.memory_space<vmem>>, vector<8x128xf32>
    %c0_3 = arith.constant 0 : index
    %c0_4 = arith.constant 0 : index
    %c0_5 = arith.constant 0 : index
    %2 = vector.load %arg2[%c0_3, %c0_4, %c0_5] : memref<8x6x128xbf16, #tpu.memory_space<vmem>>, vector<8x6x128xbf16>
    %3 = vector.shape_cast %0 : vector<8x128xf32> to vector<8x1x128xf32>
    %4 = vector.shape_cast %1 : vector<8x128xf32> to vector<8x128x1xf32>
    %5 = vector.broadcast %3 : vector<8x1x128xf32> to vector<8x128x128xf32>
    %6 = vector.broadcast %4 : vector<8x128x1xf32> to vector<8x128x128xf32>
    %7 = arith.cmpf ole, %5, %6 : vector<8x128x128xf32>
    %8 = arith.extui %7 : vector<8x128x128xi1> to vector<8x128x128xi32>
    %9 = arith.sitofp %8 : vector<8x128x128xi32> to vector<8x128x128xf32>
    %10 = arith.truncf %9 : vector<8x128x128xf32> to vector<8x128x128xbf16>
    "tpu.trace_start"() <{level = 10 : i32, message = "rpm,rmk->rpk"}> : () -> ()
    %cst = arith.constant dense<0.000000e+00> : vector<8x6x128xf32>
    %11 = tpu.matmul %2, %10, %cst {dimension_numbers = #tpu.dot_dimension_numbers<[2], [1], [1], [2], [0, 0, 0, 1, 1, 2], [0], [0]>} : vector<8x6x128xbf16>, vector<8x128x128xbf16>, vector<8x6x128xf32> -> vector<8x6x128xf32>
    "tpu.trace_stop"() : () -> ()
    %12 = arith.fptosi %11 : vector<8x6x128xf32> to vector<8x6x128xi32>
    %13 = vector.extract_strided_slice %12 {offsets = [0, 0, 0], sizes = [8, 1, 128], strides = [1, 1, 1]} : vector<8x6x128xi32> to vector<8x1x128xi32>
    %14 = vector.shape_cast %13 : vector<8x1x128xi32> to vector<8x128xi32>
    %15 = vector.extract_strided_slice %12 {offsets = [0, 1, 0], sizes = [8, 1, 128], strides = [1, 1, 1]} : vector<8x6x128xi32> to vector<8x1x128xi32>
    %16 = vector.shape_cast %15 : vector<8x1x128xi32> to vector<8x128xi32>
    %c8_i32 = arith.constant 8 : i32
    %17 = vector.broadcast %c8_i32 : i32 to vector<8x128xi32>
    %18 = arith.shli %16, %17 : vector<8x128xi32>
    %19 = arith.ori %14, %18 : vector<8x128xi32>
    %20 = vector.extract_strided_slice %12 {offsets = [0, 2, 0], sizes = [8, 1, 128], strides = [1, 1, 1]} : vector<8x6x128xi32> to vector<8x1x128xi32>
    %21 = vector.shape_cast %20 : vector<8x1x128xi32> to vector<8x128xi32>
    %22 = vector.extract_strided_slice %12 {offsets = [0, 3, 0], sizes = [8, 1, 128], strides = [1, 1, 1]} : vector<8x6x128xi32> to vector<8x1x128xi32>
    %23 = vector.shape_cast %22 : vector<8x1x128xi32> to vector<8x128xi32>
    %c8_i32_6 = arith.constant 8 : i32
    %24 = vector.broadcast %c8_i32_6 : i32 to vector<8x128xi32>
    %25 = arith.shli %23, %24 : vector<8x128xi32>
    %26 = arith.ori %21, %25 : vector<8x128xi32>
    %27 = vector.extract_strided_slice %12 {offsets = [0, 4, 0], sizes = [8, 1, 128], strides = [1, 1, 1]} : vector<8x6x128xi32> to vector<8x1x128xi32>
    %28 = vector.shape_cast %27 : vector<8x1x128xi32> to vector<8x128xi32>
    %c16_i32 = arith.constant 16 : i32
    %29 = vector.broadcast %c16_i32 : i32 to vector<8x128xi32>
    %30 = arith.shli %28, %29 : vector<8x128xi32>
    %31 = arith.ori %26, %30 : vector<8x128xi32>
    %32 = vector.extract_strided_slice %12 {offsets = [0, 5, 0], sizes = [8, 1, 128], strides = [1, 1, 1]} : vector<8x6x128xi32> to vector<8x1x128xi32>
    %33 = vector.shape_cast %32 : vector<8x1x128xi32> to vector<8x128xi32>
    %c24_i32 = arith.constant 24 : i32
    %34 = vector.broadcast %c24_i32 : i32 to vector<8x128xi32>
    %35 = arith.shli %33, %34 : vector<8x128xi32>
    %36 = arith.ori %31, %35 : vector<8x128xi32>
    %c0_7 = arith.constant 0 : index
    %c0_8 = arith.constant 0 : index
    %37 = vector.load %arg4[%c0_7, %c0_8] : memref<8x128xi32, #tpu.memory_space<vmem>>, vector<8x128xi32>
    tpu.vector_store %arg4[%c0_7, %c0_8], %19 {strides = array<i32>} : memref<8x128xi32, #tpu.memory_space<vmem>>, vector<8x128xi32>,
    %c0_9 = arith.constant 0 : index
    %c0_10 = arith.constant 0 : index
    %38 = vector.load %arg5[%c0_9, %c0_10] : memref<8x128xi32, #tpu.memory_space<vmem>>, vector<8x128xi32>
    tpu.vector_store %arg5[%c0_9, %c0_10], %36 {strides = array<i32>} : memref<8x128xi32, #tpu.memory_space<vmem>>, vector<8x128xi32>,
    return
  }
  func.func @transform_0(%arg0: i32) -> (i32, i32) {
    %c0_i32 = arith.constant 0 : i32
    %c0_i32_0 = arith.constant 0 : i32
    return %arg0, %c0_i32 : i32, i32
  }
  func.func @transform_1(%arg0: i32) -> (i32, i32, i32) {
    %c0_i32 = arith.constant 0 : i32
    %c0_i32_0 = arith.constant 0 : i32
    %c0_i32_1 = arith.constant 0 : i32
    return %arg0, %c0_i32, %c0_i32_0 : i32, i32, i32
  }
  func.func @transform_2(%arg0: i32) -> (i32, i32) {
    %c0_i32 = arith.constant 0 : i32
    %c0_i32_0 = arith.constant 0 : i32
    return %arg0, %c0_i32 : i32, i32
  }
  func.func @transform_3(%arg0: i32) -> (i32, i32) {
    %c0_i32 = arith.constant 0 : i32
    %c0_i32_0 = arith.constant 0 : i32
    return %arg0, %c0_i32 : i32, i32
  }
  func.func @transform_4(%arg0: i32) -> (i32, i32) {
    %c0_i32 = arith.constant 0 : i32
    %c0_i32_0 = arith.constant 0 : i32
    return %arg0, %c0_i32 : i32, i32
  }
}

</mosaic_0001>

<bundles_post_ra>
// kernel: tpu_custom_call.1
= control target key start
LH: loop header
LB: loop body
LE: loop exit
PB: predicated region body
PF: predicated region fallthrough
CT: control target
= control target key end

     0   :  { %10 = vsyncpa [#allocation3], 0  ;;  %v34_v0 = vlaneseq  ;;  %v2127_v1 = vmov 0.0   ;;  %s2649_s0 = inlined_call_operand.vmem [shape: f32[8,128], index: 0, kind: input, shape index: {}]   ;;  %s2650_s1 = inlined_call_operand.vmem [shape: bf16[8,6,128], index: 1, kind: input, shape index: {}]   ;;  %s2651_s2 = inlined_call_operand.vmem [shape: f32[8,128], index: 2, kind: input, shape index: {}]   ;;  %s2652_s3 = inlined_call_operand.hbm [shape: s32[8,128], index: 3, kind: output, shape index: {0}]   ;;  %s2653_s4 = inlined_call_operand.hbm [shape: s32[8,128], index: 4, kind: output, shape index: {1}]  }
   0x1   :  { %1896 = vmatprep.subr.bf16.mxu0 %v2127_v1  ;;  %1916 = vmatprep.subr.bf16.mxu1 %v2127_v1 }
   0x2   :  { %11 = vsyncpa [#allocation5], 0  ;;  %v2160_v2 = vshrl.u32 %v34_v0, 7  ;;  %v2165_v3 = vld [vmem:[%s2649_s0] sm:$0xff]  ;;  %vm2128_vm0 = vmmov 0   ;;  %s2132_s8 = smov [#allocation4]  }
   0x3   :  { %1912 = vmatprep.mubr.msk.bf16.mxu0 %vm2128_vm0, %v2127_v1  ;;  %1932 = vmatprep.mubr.msk.bf16.mxu1 %vm2128_vm0, %v2127_v1  ;;  %v2129_v12 = vmov 1966171168   ;;  %v2188_v16 = vld [vmem:[%s2651_s2] sm:$0xff]  ;;  %v2130_v28 = vmov 1.0|1.0   ;;  %s1556_s9 = sshll.u32 %s2132_s8, 4  ;;  %s1557_s9 = int_to_ptr.vmem [resolvable:$true] %s1556_s9 }
   0x4   :  { %v148_v4 = vsub.s32 1, %v2160_v2  ;;  %v2169_v5 = vsub.s32 0, %v2160_v2  ;;  %v215_v8 = vsub.s32 2, %v2160_v2  ;;  %v282_v10 = vsub.s32 3, %v2160_v2  ;;  %v21_v61 = vld [vmem:[%s2650_s1] sm:$0x7] }
   0x5   :  { %v32_v13 = vunpack.c.l.s4 %v2129_v12  ;;  %v349_v27 = vsub.s32 4, %v2160_v2  ;;  %v416_v32 = vsub.s32 5, %v2160_v2 }
   0x6   :  { %v149_v6 = vrot.slane %v2165_v3, %v148_v4  ;;  %v82_v7 = vrot.slane %v2165_v3, %v2169_v5  ;;  %v216_v9 = vrot.slane %v2165_v3, %v215_v8  ;;  %v283_v11 = vrot.slane %v2165_v3, %v282_v10 }
   0x7   :  { %v33_v14 = vunpack.c.0.s8 %v32_v13  ;;  %v2218_v31 = vrot.slane %v2165_v3, %v349_v27  ;;  %v2228_v35 = vrot.slane %v2165_v3, %v416_v32  ;;  %v483_v10 = vsub.s32 6, %v2160_v2 }
   0x8   :  { %151 = vbcast.lane.b32.xlu1 %v149_v6, 256  ;;  %84 = vbcast.lane.b32.xlu0 %v82_v7, 256 }
   0x9   :  { %v2183_v15 = vsub.s32 %v33_v14, %v2160_v2  ;;  %v2342_v13 = vrot.slane %v2165_v3, %v483_v10  ;;  %v550_v14 = vsub.s32 7, %v2160_v2 }
   0xb   :  { %v37_v17 = vrot.slane %v2188_v16, %v2183_v15 }
   0xc   :  { %155 = vbcast.lane.b32.xlu1 %v149_v6, 264  ;;  %88 = vbcast.lane.b32.xlu0 %v82_v7, 264 }
   0xd   :  { %v45_v18 = vcombine.high %v37_v17, %v37_v17  ;;  %v2193_v19 = vrot.slane %v37_v17, %v2183_v15 }
   0xf   :  { %v2196_v20 = vrot.slane %v45_v18, %v2183_v15  ;;  %v2200_v23 = vrot.slane %v2193_v19, %v2169_v5  ;;  %v75_v58 = vcombine.high %v2193_v19, %v2193_v19  ;;  %v2352_v19 = vrot.slane %v2165_v3, %v550_v14 }
  0x10   :  { %96 = vbcast.lane.b32.xlu1 %v82_v7, 280  ;;  %92 = vbcast.lane.b32.xlu0 %v82_v7, 272 }
  0x11   :  { %v2204_v24 = vrot.slane %v2196_v20, %v2169_v5  ;;  %v2306_v62 = vrot.slane %v75_v58, %v2169_v5  ;;  %v77_v63 = vcombine.high %v2196_v20, %v2196_v20 }
  0x14   :  { %163 = vbcast.lane.b32.xlu1 %v149_v6, 280  ;;  %159 = vbcast.lane.b32.xlu0 %v149_v6, 272 }
  0x18   :  { %104 = vbcast.lane.b32.xlu1 %v82_v7, 296  ;;  %100 = vbcast.lane.b32.xlu0 %v82_v7, 288 }
  0x1c   :  { %171 = vbcast.lane.b32.xlu1 %v149_v6, 296  ;;  %167 = vbcast.lane.b32.xlu0 %v149_v6, 288 }
  0x20   :  { %112 = vbcast.lane.b32.xlu1 %v82_v7, 312  ;;  %108 = vbcast.lane.b32.xlu0 %v82_v7, 304 }
  0x24   :  { %179 = vbcast.lane.b32.xlu1 %v149_v6, 312  ;;  %175 = vbcast.lane.b32.xlu0 %v149_v6, 304 }
  0x28   :  { %120 = vbcast.lane.b32.xlu1 %v82_v7, 328  ;;  %116 = vbcast.lane.b32.xlu0 %v82_v7, 320 }
  0x2c   :  { %187 = vbcast.lane.b32.xlu1 %v149_v6, 328  ;;  %183 = vbcast.lane.b32.xlu0 %v149_v6, 320 }
  0x30   :  { %128 = vbcast.lane.b32.xlu1 %v82_v7, 344  ;;  %124 = vbcast.lane.b32.xlu0 %v82_v7, 336 }
  0x34   :  { %195 = vbcast.lane.b32.xlu1 %v149_v6, 344  ;;  %191 = vbcast.lane.b32.xlu0 %v149_v6, 336 }
  0x38   :  { %136 = vbcast.lane.b32.xlu1 %v82_v7, 360  ;;  %132 = vbcast.lane.b32.xlu0 %v82_v7, 352 }
  0x3c   :  { %203 = vbcast.lane.b32.xlu1 %v149_v6, 360  ;;  %199 = vbcast.lane.b32.xlu0 %v149_v6, 352 }
  0x40   :  { %144 = vbcast.lane.b32.xlu1 %v82_v7, 376  ;;  %140 = vbcast.lane.b32.xlu0 %v82_v7, 368  ;;  %v2322_v7 = vrot.slane %v77_v63, %v2169_v5 }
  0x44   :  { %211 = vbcast.lane.b32.xlu1 %v149_v6, 376  ;;  %207 = vbcast.lane.b32.xlu0 %v149_v6, 368  ;;  %v22_v6 = vld [vmem:[%s2650_s1 + $0x4] sm:$0x7] }
  0x48   :  { %222 = vbcast.lane.b32.xlu1 %v216_v9, 264  ;;  %218 = vbcast.lane.b32.xlu0 %v216_v9, 256 }
  0x4c   :  { %289 = vbcast.lane.b32.xlu1 %v283_v11, 264  ;;  %285 = vbcast.lane.b32.xlu0 %v283_v11, 256 }
  0x50   :  { %230 = vbcast.lane.b32.xlu1 %v216_v9, 280  ;;  %226 = vbcast.lane.b32.xlu0 %v216_v9, 272 }
  0x54   :  { %297 = vbcast.lane.b32.xlu1 %v283_v11, 280  ;;  %293 = vbcast.lane.b32.xlu0 %v283_v11, 272 }
  0x58   :  { %238 = vbcast.lane.b32.xlu1 %v216_v9, 296  ;;  %234 = vbcast.lane.b32.xlu0 %v216_v9, 288 }
  0x5c   :  { %305 = vbcast.lane.b32.xlu1 %v283_v11, 296  ;;  %301 = vbcast.lane.b32.xlu0 %v283_v11, 288 }
  0x60   :  { %246 = vbcast.lane.b32.xlu1 %v216_v9, 312  ;;  %242 = vbcast.lane.b32.xlu0 %v216_v9, 304 }
  0x64   :  { %313 = vbcast.lane.b32.xlu1 %v283_v11, 312  ;;  %309 = vbcast.lane.b32.xlu0 %v283_v11, 304 }
  0x68   :  { %254 = vbcast.lane.b32.xlu1 %v216_v9, 328  ;;  %250 = vbcast.lane.b32.xlu0 %v216_v9, 320 }
  0x6c   :  { %321 = vbcast.lane.b32.xlu1 %v283_v11, 328  ;;  %317 = vbcast.lane.b32.xlu0 %v283_v11, 320 }
  0x70   :  { %262 = vbcast.lane.b32.xlu1 %v216_v9, 344  ;;  %258 = vbcast.lane.b32.xlu0 %v216_v9, 336 }
  0x74   :  { %329 = vbcast.lane.b32.xlu1 %v283_v11, 344  ;;  %325 = vbcast.lane.b32.xlu0 %v283_v11, 336 }
  0x78   :  { %270 = vbcast.lane.b32.xlu1 %v216_v9, 360  ;;  %266 = vbcast.lane.b32.xlu0 %v216_v9, 352 }
  0x7a   :  { %v152_v21 = vpop.permute.xlu1 %151  ;;  %v85_v22 = vpop.permute.xlu0 %84 }
  0x7b   :  { %vm655_vm1 = vcmp.le.f32.partialorder %v2200_v23, %v85_v22  ;;  %vm671_vm4 = vcmp.le.f32.partialorder %v2204_v24, %v152_v21 }
  0x7c   :  { %337 = vbcast.lane.b32.xlu1 %v283_v11, 360  ;;  %333 = vbcast.lane.b32.xlu0 %v283_v11, 352 }
  0x7e   :  { %v156_v25 = vpop.permute.xlu1 %155  ;;  %v89_v26 = vpop.permute.xlu0 %88 }
  0x7f   :  { %vm672_vm2 = vcmp.le.f32.partialorder %v2204_v24, %v156_v25  ;;  %vm656_vm3 = vcmp.le.f32.partialorder %v2200_v23, %v89_v26 }
  0x80   :  { %278 = vbcast.lane.b32.xlu1 %v216_v9, 376  ;;  %274 = vbcast.lane.b32.xlu0 %v216_v9, 368  ;;  %vm1696_vm5 = vmpackc.low %vm656_vm3, %vm655_vm1 }
  0x81   :  { %1897 = vmatpush3.bf16.msk.msra.mxu0 %vm1696_vm5, %v2130_v28  ;;  %vm1712_vm6 = vmpackc.low %vm672_vm2, %vm671_vm4 }
  0x82   :  { %1917 = vmatpush3.bf16.msk.msra.mxu1 %vm1712_vm6, %v2130_v28  ;;  %v97_v29 = vpop.permute.xlu1 %96  ;;  %v93_v30 = vpop.permute.xlu0 %92  ;;  %1898 = vmatprep.subr.bf16.mxu0 %v2127_v1 }
  0x83   :  { %vm658_vm7 = vcmp.le.f32.partialorder %v2200_v23, %v97_v29  ;;  %vm657_vm8 = vcmp.le.f32.partialorder %v2200_v23, %v93_v30  ;;  %1918 = vmatprep.subr.bf16.mxu1 %v2127_v1 }
  0x84   :  { %vm1698_vm9 = vmpackc.low %vm658_vm7, %vm657_vm8  ;;  %345 = vbcast.lane.b32.xlu1 %v283_v11, 376  ;;  %341 = vbcast.lane.b32.xlu0 %v283_v11, 368 }
  0x85   :  { %1899 = vmatpush3.bf16.msk.msra.mxu0 %vm1698_vm9, %v2130_v28 }
  0x86   :  { %v164_v33 = vpop.permute.xlu1 %163  ;;  %v160_v34 = vpop.permute.xlu0 %159  ;;  %1900 = vmatprep.subr.bf16.mxu0 %v2127_v1 }
  0x87   :  { %vm674_vm10 = vcmp.le.f32.partialorder %v2204_v24, %v164_v33  ;;  %vm673_vm11 = vcmp.le.f32.partialorder %v2204_v24, %v160_v34 }
  0x88   :  { %vm1714_vm12 = vmpackc.low %vm674_vm10, %vm673_vm11  ;;  %356 = vbcast.lane.b32.xlu1 %v2218_v31, 264  ;;  %352 = vbcast.lane.b32.xlu0 %v2218_v31, 256 }
  0x89   :  { %1919 = vmatpush3.bf16.msk.msra.mxu1 %vm1714_vm12, %v2130_v28 }
  0x8a   :  { %v105_v36 = vpop.permute.xlu1 %104  ;;  %v101_v37 = vpop.permute.xlu0 %100  ;;  %1920 = vmatprep.subr.bf16.mxu1 %v2127_v1 }
  0x8b   :  { %vm660_vm13 = vcmp.le.f32.partialorder %v2200_v23, %v105_v36  ;;  %vm659_vm14 = vcmp.le.f32.partialorder %v2200_v23, %v101_v37  ;;  %v30_v37 = vcombine.high %v2188_v16, %v2188_v16 }
  0x8c   :  { %vm1700_vm15 = vmpackc.low %vm660_vm13, %vm659_vm14  ;;  %423 = vbcast.lane.b32.xlu1 %v2228_v35, 264  ;;  %419 = vbcast.lane.b32.xlu0 %v2228_v35, 256 }
  0x8d   :  { %1901 = vmatpush3.bf16.msk.msra.mxu0 %vm1700_vm15, %v2130_v28 }
  0x8e   :  { %v172_v38 = vpop.permute.xlu1 %171  ;;  %v168_v39 = vpop.permute.xlu0 %167  ;;  %1902 = vmatprep.subr.bf16.mxu0 %v2127_v1 }
  0x8f   :  { %vm676_vm1 = vcmp.le.f32.partialorder %v2204_v24, %v172_v38  ;;  %vm675_vm2 = vcmp.le.f32.partialorder %v2204_v24, %v168_v39 }
  0x90   :  { %vm1716_vm3 = vmpackc.low %vm676_vm1, %vm675_vm2  ;;  %364 = vbcast.lane.b32.xlu1 %v2218_v31, 280  ;;  %360 = vbcast.lane.b32.xlu0 %v2218_v31, 272 }
  0x91   :  { %1921 = vmatpush3.bf16.msk.msra.mxu1 %vm1716_vm3, %v2130_v28 }
  0x92   :  { %v113_v40 = vpop.permute.xlu1 %112  ;;  %v109_v41 = vpop.permute.xlu0 %108  ;;  %1922 = vmatprep.subr.bf16.mxu1 %v2127_v1 }
  0x93   :  { %vm662_vm4 = vcmp.le.f32.partialorder %v2200_v23, %v113_v40  ;;  %vm661_vm5 = vcmp.le.f32.partialorder %v2200_v23, %v109_v41  ;;  %v44_v40 = vrot.slane %v30_v37, %v2183_v15 }
  0x94   :  { %vm1702_vm6 = vmpackc.low %vm662_vm4, %vm661_vm5  ;;  %431 = vbcast.lane.b32.xlu1 %v2228_v35, 280  ;;  %427 = vbcast.lane.b32.xlu0 %v2228_v35, 272 }
  0x95   :  { %1903 = vmatpush3.bf16.msk.msra.mxu0 %vm1702_vm6, %v2130_v28 }
  0x96   :  { %v180_v42 = vpop.permute.xlu1 %179  ;;  %v176_v43 = vpop.permute.xlu0 %175  ;;  %1904 = vmatprep.subr.bf16.mxu0 %v2127_v1 }
  0x97   :  { %vm678_vm7 = vcmp.le.f32.partialorder %v2204_v24, %v180_v42  ;;  %vm677_vm8 = vcmp.le.f32.partialorder %v2204_v24, %v176_v43  ;;  %v2422_v42 = vrot.slane %v44_v40, %v2183_v15  ;;  %v46_v43 = vcombine.high %v44_v40, %v44_v40 }
  0x98   :  { %vm1718_vm9 = vmpackc.low %vm678_vm7, %vm677_vm8  ;;  %372 = vbcast.lane.b32.xlu1 %v2218_v31, 296  ;;  %368 = vbcast.lane.b32.xlu0 %v2218_v31, 288 }
  0x99   :  { %1923 = vmatpush3.bf16.msk.msra.mxu1 %vm1718_vm9, %v2130_v28 }
  0x9a   :  { %v121_v44 = vpop.permute.xlu1 %120  ;;  %v117_v45 = vpop.permute.xlu0 %116  ;;  %1924 = vmatprep.subr.bf16.mxu1 %v2127_v1 }
  0x9b   :  { %vm664_vm10 = vcmp.le.f32.partialorder %v2200_v23, %v121_v44  ;;  %vm663_vm11 = vcmp.le.f32.partialorder %v2200_v23, %v117_v45 }
  0x9c   :  { %vm1704_vm12 = vmpackc.low %vm664_vm10, %vm663_vm11  ;;  %439 = vbcast.lane.b32.xlu1 %v2228_v35, 296  ;;  %435 = vbcast.lane.b32.xlu0 %v2228_v35, 288 }
  0x9d   :  { %1905 = vmatpush3.bf16.msk.msra.mxu0 %vm1704_vm12, %v2130_v28 }
  0x9e   :  { %v188_v46 = vpop.permute.xlu1 %187  ;;  %v184_v47 = vpop.permute.xlu0 %183  ;;  %1906 = vmatprep.subr.bf16.mxu0 %v2127_v1 }
  0x9f   :  { %vm680_vm13 = vcmp.le.f32.partialorder %v2204_v24, %v188_v46  ;;  %vm679_vm14 = vcmp.le.f32.partialorder %v2204_v24, %v184_v47  ;;  %v23_v46 = vld [vmem:[%s2650_s1 + $0x8] sm:$0x7]  ;;  %v2435_v47 = vrot.slane %v2422_v42, %v2169_v5 }
  0xa0   :  { %vm1720_vm15 = vmpackc.low %vm680_vm13, %vm679_vm14  ;;  %380 = vbcast.lane.b32.xlu1 %v2218_v31, 312  ;;  %376 = vbcast.lane.b32.xlu0 %v2218_v31, 304 }
  0xa1   :  { %1925 = vmatpush3.bf16.msk.msra.mxu1 %vm1720_vm15, %v2130_v28 }
  0xa2   :  { %v129_v48 = vpop.permute.xlu1 %128  ;;  %v125_v49 = vpop.permute.xlu0 %124  ;;  %1926 = vmatprep.subr.bf16.mxu1 %v2127_v1 }
  0xa3   :  { %vm666_vm1 = vcmp.le.f32.partialorder %v2200_v23, %v129_v48  ;;  %vm665_vm2 = vcmp.le.f32.partialorder %v2200_v23, %v125_v49  ;;  %v2438_v48 = vrot.slane %v46_v43, %v2183_v15 }
  0xa4   :  { %vm1706_vm3 = vmpackc.low %vm666_vm1, %vm665_vm2  ;;  %447 = vbcast.lane.b32.xlu1 %v2228_v35, 312  ;;  %443 = vbcast.lane.b32.xlu0 %v2228_v35, 304 }
  0xa5   :  { %1907 = vmatpush3.bf16.msk.msra.mxu0 %vm1706_vm3, %v2130_v28  ;;  %v2453_v15 = vrot.slane %v2438_v48, %v2169_v5 }
  0xa6   :  { %v196_v50 = vpop.permute.xlu1 %195  ;;  %v192_v51 = vpop.permute.xlu0 %191  ;;  %1908 = vmatprep.subr.bf16.mxu0 %v2127_v1 }
  0xa7   :  { %vm682_vm4 = vcmp.le.f32.partialorder %v2204_v24, %v196_v50  ;;  %vm681_vm5 = vcmp.le.f32.partialorder %v2204_v24, %v192_v51  ;;  %v24_v51 = vld [vmem:[%s2650_s1 + $0xc] sm:$0x7] }
  0xa8   :  { %vm1722_vm6 = vmpackc.low %vm682_vm4, %vm681_vm5  ;;  %388 = vbcast.lane.b32.xlu1 %v2218_v31, 328  ;;  %384 = vbcast.lane.b32.xlu0 %v2218_v31, 320 }
  0xa9   :  { %1927 = vmatpush3.bf16.msk.msra.mxu1 %vm1722_vm6, %v2130_v28 }
  0xaa   :  { %v137_v52 = vpop.permute.xlu1 %136  ;;  %v133_v53 = vpop.permute.xlu0 %132  ;;  %1928 = vmatprep.subr.bf16.mxu1 %v2127_v1 }
  0xab   :  { %vm668_vm7 = vcmp.le.f32.partialorder %v2200_v23, %v137_v52  ;;  %vm667_vm8 = vcmp.le.f32.partialorder %v2200_v23, %v133_v53 }
  0xac   :  { %vm1708_vm9 = vmpackc.low %vm668_vm7, %vm667_vm8  ;;  %455 = vbcast.lane.b32.xlu1 %v2228_v35, 328  ;;  %451 = vbcast.lane.b32.xlu0 %v2228_v35, 320 }
  0xad   :  { %1909 = vmatpush3.bf16.msk.msra.mxu0 %vm1708_vm9, %v2130_v28 }
  0xae   :  { %v204_v54 = vpop.permute.xlu1 %203  ;;  %v200_v55 = vpop.permute.xlu0 %199  ;;  %1910 = vmatprep.subr.bf16.mxu0 %v2127_v1 }
  0xaf   :  { %vm684_vm10 = vcmp.le.f32.partialorder %v2204_v24, %v204_v54  ;;  %vm683_vm11 = vcmp.le.f32.partialorder %v2204_v24, %v200_v55 }
  0xb0   :  { %vm1724_vm12 = vmpackc.low %vm684_vm10, %vm683_vm11  ;;  %396 = vbcast.lane.b32.xlu1 %v2218_v31, 344  ;;  %392 = vbcast.lane.b32.xlu0 %v2218_v31, 336 }
  0xb1   :  { %1929 = vmatpush3.bf16.msk.msra.mxu1 %vm1724_vm12, %v2130_v28 }
  0xb2   :  { %v145_v56 = vpop.permute.xlu1 %144  ;;  %v141_v57 = vpop.permute.xlu0 %140  ;;  %1930 = vmatprep.subr.bf16.mxu1 %v2127_v1 }
  0xb3   :  { %vm670_vm13 = vcmp.le.f32.partialorder %v2200_v23, %v145_v56  ;;  %vm669_vm14 = vcmp.le.f32.partialorder %v2200_v23, %v141_v57 }
  0xb4   :  { %vm1710_vm15 = vmpackc.low %vm670_vm13, %vm669_vm14  ;;  %463 = vbcast.lane.b32.xlu1 %v2228_v35, 344  ;;  %459 = vbcast.lane.b32.xlu0 %v2228_v35, 336 }
  0xb5   :  { %1911 = vmatpush3.bf16.msk.msra.mxu0 %vm1710_vm15, %v2130_v28 }
  0xb6   :  { %v212_v59 = vpop.permute.xlu1 %211  ;;  %v208_v60 = vpop.permute.xlu0 %207  ;;  %1936 = vmatprep.subr.bf16.mxu0 %v2127_v1 }
  0xb7   :  { %vm686_vm1 = vcmp.le.f32.partialorder %v2204_v24, %v212_v59  ;;  %vm685_vm2 = vcmp.le.f32.partialorder %v2204_v24, %v208_v60 }
  0xb8   :  { %vm1726_vm3 = vmpackc.low %vm686_vm1, %vm685_vm2  ;;  %404 = vbcast.lane.b32.xlu1 %v2218_v31, 360  ;;  %400 = vbcast.lane.b32.xlu0 %v2218_v31, 352 }
  0xb9   :  { %1931 = vmatpush3.bf16.msk.msra.mxu1 %vm1726_vm3, %v2130_v28  ;;  %1913 = vmatmul.mubr.bf16.vlgmr.msra.gmra.mrb[0].mxu0 %v21_v61 }
  0xba   :  { %v223_v0 = vpop.permute.xlu1 %222  ;;  %v219_v4 = vpop.permute.xlu0 %218  ;;  %1956 = vmatprep.subr.bf16.mxu1 %v2127_v1  ;;  %1952 = vmatprep.mubr.msk.bf16.mxu0 %vm2128_vm0, %v2127_v1 }
  0xbb   :  { %vm688_vm4 = vcmp.le.f32.partialorder %v2306_v62, %v223_v0  ;;  %vm687_vm5 = vcmp.le.f32.partialorder %v2306_v62, %v219_v4 }
  0xbc   :  { %vm1728_vm6 = vmpackc.low %vm688_vm4, %vm687_vm5  ;;  %471 = vbcast.lane.b32.xlu1 %v2228_v35, 360  ;;  %467 = vbcast.lane.b32.xlu0 %v2228_v35, 352 }
  0xbd   :  { %1937 = vmatpush3.bf16.msk.msra.mxu0 %vm1728_vm6, %v2130_v28  ;;  %1933 = vmatmul.mubr.bf16.vlgmr.msra.gmra.mrb[0].mxu1 %v22_v6 }
  0xbe   :  { %v290_v8 = vpop.permute.xlu1 %289  ;;  %v286_v9 = vpop.permute.xlu0 %285  ;;  %1938 = vmatprep.subr.bf16.mxu0 %v2127_v1  ;;  %1972 = vmatprep.mubr.msk.bf16.mxu1 %vm2128_vm0, %v2127_v1 }
  0xbf   :  { %vm704_vm7 = vcmp.le.f32.partialorder %v2322_v7, %v290_v8  ;;  %vm703_vm8 = vcmp.le.f32.partialorder %v2322_v7, %v286_v9 }
  0xc0   :  { %vm1744_vm9 = vmpackc.low %vm704_vm7, %vm703_vm8  ;;  %412 = vbcast.lane.b32.xlu1 %v2218_v31, 376  ;;  %408 = vbcast.lane.b32.xlu0 %v2218_v31, 368 }
  0xc1   :  { %1957 = vmatpush3.bf16.msk.msra.mxu1 %vm1744_vm9, %v2130_v28 }
  0xc2   :  { %v231_v11 = vpop.permute.xlu1 %230  ;;  %v227_v12 = vpop.permute.xlu0 %226  ;;  %1958 = vmatprep.subr.bf16.mxu1 %v2127_v1 }
  0xc3   :  { %vm690_vm10 = vcmp.le.f32.partialorder %v2306_v62, %v231_v11  ;;  %vm689_vm11 = vcmp.le.f32.partialorder %v2306_v62, %v227_v12 }
  0xc4   :  { %vm1730_vm12 = vmpackc.low %vm690_vm10, %vm689_vm11  ;;  %479 = vbcast.lane.b32.xlu1 %v2228_v35, 376  ;;  %475 = vbcast.lane.b32.xlu0 %v2228_v35, 368 }
  0xc5   :  { %1939 = vmatpush3.bf16.msk.msra.mxu0 %vm1730_vm12, %v2130_v28 }
  0xc6   :  { %v298_v17 = vpop.permute.xlu1 %297  ;;  %v294_v18 = vpop.permute.xlu0 %293  ;;  %1940 = vmatprep.subr.bf16.mxu0 %v2127_v1 }
  0xc7   :  { %vm706_vm13 = vcmp.le.f32.partialorder %v2322_v7, %v298_v17  ;;  %vm705_vm14 = vcmp.le.f32.partialorder %v2322_v7, %v294_v18 }
  0xc8   :  { %vm1746_vm15 = vmpackc.low %vm706_vm13, %vm705_vm14  ;;  %490 = vbcast.lane.b32.xlu1 %v2342_v13, 264  ;;  %486 = vbcast.lane.b32.xlu0 %v2342_v13, 256 }
  0xc9   :  { %1959 = vmatpush3.bf16.msk.msra.mxu1 %vm1746_vm15, %v2130_v28 }
  0xca   :  { %v239_v2 = vpop.permute.xlu1 %238  ;;  %v235_v20 = vpop.permute.xlu0 %234  ;;  %1960 = vmatprep.subr.bf16.mxu1 %v2127_v1 }
  0xcb   :  { %vm692_vm1 = vcmp.le.f32.partialorder %v2306_v62, %v239_v2  ;;  %vm691_vm2 = vcmp.le.f32.partialorder %v2306_v62, %v235_v20 }
  0xcc   :  { %vm1732_vm3 = vmpackc.low %vm692_vm1, %vm691_vm2  ;;  %557 = vbcast.lane.b32.xlu1 %v2352_v19, 264  ;;  %553 = vbcast.lane.b32.xlu0 %v2352_v19, 256 }
  0xcd   :  { %1941 = vmatpush3.bf16.msk.msra.mxu0 %vm1732_vm3, %v2130_v28 }
  0xce   :  { %v306_v21 = vpop.permute.xlu1 %305  ;;  %v302_v3 = vpop.permute.xlu0 %301  ;;  %1942 = vmatprep.subr.bf16.mxu0 %v2127_v1 }
  0xcf   :  { %vm708_vm4 = vcmp.le.f32.partialorder %v2322_v7, %v306_v21  ;;  %vm707_vm5 = vcmp.le.f32.partialorder %v2322_v7, %v302_v3  ;;  %v76_v21 = vcombine.high %v2422_v42, %v2422_v42  ;;  %v25_v3 = vld [vmem:[%s2650_s1 + $0x10] sm:$0x7] }
  0xd0   :  { %vm1748_vm6 = vmpackc.low %vm708_vm4, %vm707_vm5  ;;  %498 = vbcast.lane.b32.xlu1 %v2342_v13, 280  ;;  %494 = vbcast.lane.b32.xlu0 %v2342_v13, 272 }
  0xd1   :  { %1961 = vmatpush3.bf16.msk.msra.mxu1 %vm1748_vm6, %v2130_v28 }
  0xd2   :  { %v247_v22 = vpop.permute.xlu1 %246  ;;  %v243_v23 = vpop.permute.xlu0 %242  ;;  %1962 = vmatprep.subr.bf16.mxu1 %v2127_v1 }
  0xd3   :  { %vm694_vm7 = vcmp.le.f32.partialorder %v2306_v62, %v247_v22  ;;  %vm693_vm8 = vcmp.le.f32.partialorder %v2306_v62, %v243_v23 }
  0xd4   :  { %vm1734_vm9 = vmpackc.low %vm694_vm7, %vm693_vm8  ;;  %565 = vbcast.lane.b32.xlu1 %v2352_v19, 280  ;;  %561 = vbcast.lane.b32.xlu0 %v2352_v19, 272 }
  0xd5   :  { %1943 = vmatpush3.bf16.msk.msra.mxu0 %vm1734_vm9, %v2130_v28 }
  0xd6   :  { %v314_v24 = vpop.permute.xlu1 %313  ;;  %v310_v25 = vpop.permute.xlu0 %309  ;;  %1944 = vmatprep.subr.bf16.mxu0 %v2127_v1 }
  0xd7   :  { %vm710_vm10 = vcmp.le.f32.partialorder %v2322_v7, %v314_v24  ;;  %vm709_vm11 = vcmp.le.f32.partialorder %v2322_v7, %v310_v25  ;;  %v2529_v24 = vrot.slane %v76_v21, %v2169_v5  ;;  %v78_v25 = vcombine.high %v2438_v48, %v2438_v48 }
  0xd8   :  { %vm1750_vm12 = vmpackc.low %vm710_vm10, %vm709_vm11  ;;  %506 = vbcast.lane.b32.xlu1 %v2342_v13, 296  ;;  %502 = vbcast.lane.b32.xlu0 %v2342_v13, 288 }
  0xd9   :  { %1963 = vmatpush3.bf16.msk.msra.mxu1 %vm1750_vm12, %v2130_v28 }
  0xda   :  { %v255_v26 = vpop.permute.xlu1 %254  ;;  %v251_v27 = vpop.permute.xlu0 %250  ;;  %1964 = vmatprep.subr.bf16.mxu1 %v2127_v1 }
  0xdb   :  { %vm696_vm13 = vcmp.le.f32.partialorder %v2306_v62, %v255_v26  ;;  %vm695_vm14 = vcmp.le.f32.partialorder %v2306_v62, %v251_v27  ;;  %v26_v26 = vld [vmem:[%s2650_s1 + $0x14] sm:$0x7] }
  0xdc   :  { %vm1736_vm15 = vmpackc.low %vm696_vm13, %vm695_vm14  ;;  %573 = vbcast.lane.b32.xlu1 %v2352_v19, 296  ;;  %569 = vbcast.lane.b32.xlu0 %v2352_v19, 288 }
  0xdd   :  { %1945 = vmatpush3.bf16.msk.msra.mxu0 %vm1736_vm15, %v2130_v28 }
  0xde   :  { %v322_v29 = vpop.permute.xlu1 %321  ;;  %v318_v30 = vpop.permute.xlu0 %317  ;;  %1946 = vmatprep.subr.bf16.mxu0 %v2127_v1 }
  0xdf   :  { %vm712_vm1 = vcmp.le.f32.partialorder %v2322_v7, %v322_v29  ;;  %vm711_vm2 = vcmp.le.f32.partialorder %v2322_v7, %v318_v30  ;;  %v2543_v30 = vrot.slane %v78_v25, %v2169_v5 }
  0xe0   :  { %vm1752_vm3 = vmpackc.low %vm712_vm1, %vm711_vm2  ;;  %514 = vbcast.lane.b32.xlu1 %v2342_v13, 312  ;;  %510 = vbcast.lane.b32.xlu0 %v2342_v13, 304 }
  0xe1   :  { %1965 = vmatpush3.bf16.msk.msra.mxu1 %vm1752_vm3, %v2130_v28 }
  0xe2   :  { %v263_v31 = vpop.permute.xlu1 %262  ;;  %v259_v32 = vpop.permute.xlu0 %258  ;;  %1966 = vmatprep.subr.bf16.mxu1 %v2127_v1 }
  0xe3   :  { %vm698_vm4 = vcmp.le.f32.partialorder %v2306_v62, %v263_v31  ;;  %vm697_vm5 = vcmp.le.f32.partialorder %v2306_v62, %v259_v32 }
  0xe4   :  { %vm1738_vm6 = vmpackc.low %vm698_vm4, %vm697_vm5  ;;  %581 = vbcast.lane.b32.xlu1 %v2352_v19, 312  ;;  %577 = vbcast.lane.b32.xlu0 %v2352_v19, 304 }
  0xe5   :  { %1947 = vmatpush3.bf16.msk.msra.mxu0 %vm1738_vm6, %v2130_v28 }
  0xe6   :  { %v330_v33 = vpop.permute.xlu1 %329  ;;  %v326_v34 = vpop.permute.xlu0 %325  ;;  %1948 = vmatprep.subr.bf16.mxu0 %v2127_v1 }
  0xe7   :  { %vm714_vm7 = vcmp.le.f32.partialorder %v2322_v7, %v330_v33  ;;  %vm713_vm8 = vcmp.le.f32.partialorder %v2322_v7, %v326_v34 }
  0xe8   :  { %vm1754_vm9 = vmpackc.low %vm714_vm7, %vm713_vm8  ;;  %522 = vbcast.lane.b32.xlu1 %v2342_v13, 328  ;;  %518 = vbcast.lane.b32.xlu0 %v2342_v13, 320 }
  0xe9   :  { %1967 = vmatpush3.bf16.msk.msra.mxu1 %vm1754_vm9, %v2130_v28 }
  0xea   :  { %v271_v35 = vpop.permute.xlu1 %270  ;;  %v267_v36 = vpop.permute.xlu0 %266  ;;  %1968 = vmatprep.subr.bf16.mxu1 %v2127_v1 }
  0xeb   :  { %vm700_vm10 = vcmp.le.f32.partialorder %v2306_v62, %v271_v35  ;;  %vm699_vm11 = vcmp.le.f32.partialorder %v2306_v62, %v267_v36 }
  0xec   :  { %vm1740_vm12 = vmpackc.low %vm700_vm10, %vm699_vm11  ;;  %589 = vbcast.lane.b32.xlu1 %v2352_v19, 328  ;;  %585 = vbcast.lane.b32.xlu0 %v2352_v19, 320 }
  0xed   :  { %1949 = vmatpush3.bf16.msk.msra.mxu0 %vm1740_vm12, %v2130_v28 }
  0xee   :  { %v338_v38 = vpop.permute.xlu1 %337  ;;  %v334_v39 = vpop.permute.xlu0 %333  ;;  %1950 = vmatprep.subr.bf16.mxu0 %v2127_v1 }
  0xef   :  { %vm716_vm13 = vcmp.le.f32.partialorder %v2322_v7, %v338_v38  ;;  %vm715_vm14 = vcmp.le.f32.partialorder %v2322_v7, %v334_v39 }
  0xf0   :  { %vm1756_vm15 = vmpackc.low %vm716_vm13, %vm715_vm14  ;;  %530 = vbcast.lane.b32.xlu1 %v2342_v13, 344  ;;  %526 = vbcast.lane.b32.xlu0 %v2342_v13, 336 }
  0xf1   :  { %1969 = vmatpush3.bf16.msk.msra.mxu1 %vm1756_vm15, %v2130_v28 }
  0xf2   :  { %v279_v16 = vpop.permute.xlu1 %278  ;;  %v275_v41 = vpop.permute.xlu0 %274  ;;  %1970 = vmatprep.subr.bf16.mxu1 %v2127_v1 }
  0xf3   :  { %vm702_vm1 = vcmp.le.f32.partialorder %v2306_v62, %v279_v16  ;;  %vm701_vm2 = vcmp.le.f32.partialorder %v2306_v62, %v275_v41 }
  0xf4   :  { %vm1742_vm3 = vmpackc.low %vm702_vm1, %vm701_vm2  ;;  %597 = vbcast.lane.b32.xlu1 %v2352_v19, 344  ;;  %593 = vbcast.lane.b32.xlu0 %v2352_v19, 336 }
  0xf5   :  { %1951 = vmatpush3.bf16.msk.msra.mxu0 %vm1742_vm3, %v2130_v28 }
  0xf6   :  { %v346_v44 = vpop.permute.xlu1 %345  ;;  %v342_v45 = vpop.permute.xlu0 %341  ;;  %1976 = vmatprep.subr.bf16.mxu0 %v2127_v1 }
  0xf7   :  { %vm718_vm4 = vcmp.le.f32.partialorder %v2322_v7, %v346_v44  ;;  %vm717_vm5 = vcmp.le.f32.partialorder %v2322_v7, %v342_v45 }
  0xf8   :  { %vm1758_vm6 = vmpackc.low %vm718_vm4, %vm717_vm5  ;;  %538 = vbcast.lane.b32.xlu1 %v2342_v13, 360  ;;  %534 = vbcast.lane.b32.xlu0 %v2342_v13, 352 }
  0xf9   :  { %1971 = vmatpush3.bf16.msk.msra.mxu1 %vm1758_vm6, %v2130_v28  ;;  %1953 = vmatmul.mubr.bf16.vlgmr.msra.gmra.mrb[4].mxu0 %v23_v46 }
  0xfa   :  { %v357_v49 = vpop.permute.xlu1 %356  ;;  %v353_v50 = vpop.permute.xlu0 %352  ;;  %1996 = vmatprep.subr.bf16.mxu1 %v2127_v1  ;;  %1992 = vmatprep.mubr.msk.bf16.mxu0 %vm2128_vm0, %v2127_v1 }
  0xfb   :  { %vm720_vm7 = vcmp.le.f32.partialorder %v2435_v47, %v357_v49  ;;  %vm719_vm8 = vcmp.le.f32.partialorder %v2435_v47, %v353_v50 }
  0xfc   :  { %vm1760_vm9 = vmpackc.low %vm720_vm7, %vm719_vm8  ;;  %605 = vbcast.lane.b32.xlu1 %v2352_v19, 360  ;;  %601 = vbcast.lane.b32.xlu0 %v2352_v19, 352 }
  0xfd   :  { %1977 = vmatpush3.bf16.msk.msra.mxu0 %vm1760_vm9, %v2130_v28  ;;  %1973 = vmatmul.mubr.bf16.vlgmr.msra.gmra.mrb[4].mxu1 %v24_v51 }
  0xfe   :  { %v424_v52 = vpop.permute.xlu1 %423  ;;  %v420_v53 = vpop.permute.xlu0 %419  ;;  %1978 = vmatprep.subr.bf16.mxu0 %v2127_v1  ;;  %2012 = vmatprep.mubr.msk.bf16.mxu1 %vm2128_vm0, %v2127_v1 }
  0xff   :  { %vm736_vm10 = vcmp.le.f32.partialorder %v2453_v15, %v424_v52  ;;  %vm735_vm11 = vcmp.le.f32.partialorder %v2453_v15, %v420_v53 }
 0x100   :  { %vm1776_vm12 = vmpackc.low %vm736_vm10, %vm735_vm11  ;;  %546 = vbcast.lane.b32.xlu1 %v2342_v13, 376  ;;  %542 = vbcast.lane.b32.xlu0 %v2342_v13, 368 }
 0x101   :  { %1997 = vmatpush3.bf16.msk.msra.mxu1 %vm1776_vm12, %v2130_v28 }
 0x102   :  { %v365_v54 = vpop.permute.xlu1 %364  ;;  %v361_v55 = vpop.permute.xlu0 %360  ;;  %1998 = vmatprep.subr.bf16.mxu1 %v2127_v1 }
 0x103   :  { %vm722_vm13 = vcmp.le.f32.partialorder %v2435_v47, %v365_v54  ;;  %vm721_vm14 = vcmp.le.f32.partialorder %v2435_v47, %v361_v55 }
 0x104   :  { %vm1762_vm15 = vmpackc.low %vm722_vm13, %vm721_vm14  ;;  %613 = vbcast.lane.b32.xlu1 %v2352_v19, 376  ;;  %609 = vbcast.lane.b32.xlu0 %v2352_v19, 368 }
 0x105   :  { %1979 = vmatpush3.bf16.msk.msra.mxu0 %vm1762_vm15, %v2130_v28 }
 0x106   :  { %v432_v56 = vpop.permute.xlu1 %431  ;;  %v428_v57 = vpop.permute.xlu0 %427  ;;  %1980 = vmatprep.subr.bf16.mxu0 %v2127_v1 }
 0x107   :  { %vm738_vm1 = vcmp.le.f32.partialorder %v2453_v15, %v432_v56  ;;  %vm737_vm2 = vcmp.le.f32.partialorder %v2453_v15, %v428_v57  ;;  %v27_v56 = vld [vmem:[%s2650_s1 + $0x18] sm:$0x7] }
 0x108   :  { %vm1778_vm3 = vmpackc.low %vm738_vm1, %vm737_vm2 }
 0x109   :  { %1999 = vmatpush3.bf16.msk.msra.mxu1 %vm1778_vm3, %v2130_v28 }
 0x10a   :  { %v373_v58 = vpop.permute.xlu1 %372  ;;  %v369_v59 = vpop.permute.xlu0 %368  ;;  %2000 = vmatprep.subr.bf16.mxu1 %v2127_v1 }
 0x10b   :  { %vm724_vm4 = vcmp.le.f32.partialorder %v2435_v47, %v373_v58  ;;  %vm723_vm5 = vcmp.le.f32.partialorder %v2435_v47, %v369_v59 }
 0x10c   :  { %vm1764_vm6 = vmpackc.low %vm724_vm4, %vm723_vm5 }
 0x10d   :  { %1981 = vmatpush3.bf16.msk.msra.mxu0 %vm1764_vm6, %v2130_v28 }
 0x10e   :  { %v440_v60 = vpop.permute.xlu1 %439  ;;  %v436_v61 = vpop.permute.xlu0 %435  ;;  %1982 = vmatprep.subr.bf16.mxu0 %v2127_v1 }
 0x10f   :  { %vm740_vm7 = vcmp.le.f32.partialorder %v2453_v15, %v440_v60  ;;  %vm739_vm8 = vcmp.le.f32.partialorder %v2453_v15, %v436_v61 }
 0x110   :  { %vm1780_vm9 = vmpackc.low %vm740_vm7, %vm739_vm8 }
 0x111   :  { %2001 = vmatpush3.bf16.msk.msra.mxu1 %vm1780_vm9, %v2130_v28 }
 0x112   :  { %v381_v62 = vpop.permute.xlu1 %380  ;;  %v377_v63 = vpop.permute.xlu0 %376  ;;  %2002 = vmatprep.subr.bf16.mxu1 %v2127_v1 }
 0x113   :  { %vm726_vm10 = vcmp.le.f32.partialorder %v2435_v47, %v381_v62  ;;  %vm725_vm11 = vcmp.le.f32.partialorder %v2435_v47, %v377_v63 }
 0x114   :  { %vm1766_vm12 = vmpackc.low %vm726_vm10, %vm725_vm11 }
 0x115   :  { %1983 = vmatpush3.bf16.msk.msra.mxu0 %vm1766_vm12, %v2130_v28 }
 0x116   :  { %v448_v0 = vpop.permute.xlu1 %447  ;;  %v444_v4 = vpop.permute.xlu0 %443  ;;  %1984 = vmatprep.subr.bf16.mxu0 %v2127_v1 }
 0x117   :  { %vm742_vm13 = vcmp.le.f32.partialorder %v2453_v15, %v448_v0  ;;  %vm741_vm14 = vcmp.le.f32.partialorder %v2453_v15, %v444_v4 }
 0x118   :  { %vm1782_vm15 = vmpackc.low %vm742_vm13, %vm741_vm14 }
 0x119   :  { %2003 = vmatpush3.bf16.msk.msra.mxu1 %vm1782_vm15, %v2130_v28 }
 0x11a   :  { %v389_v6 = vpop.permute.xlu1 %388  ;;  %v385_v7 = vpop.permute.xlu0 %384  ;;  %2004 = vmatprep.subr.bf16.mxu1 %v2127_v1 }
 0x11b   :  { %vm728_vm1 = vcmp.le.f32.partialorder %v2435_v47, %v389_v6  ;;  %vm727_vm2 = vcmp.le.f32.partialorder %v2435_v47, %v385_v7 }
 0x11c   :  { %vm1768_vm3 = vmpackc.low %vm728_vm1, %vm727_vm2 }
 0x11d   :  { %1985 = vmatpush3.bf16.msk.msra.mxu0 %vm1768_vm3, %v2130_v28 }
 0x11e   :  { %v456_v8 = vpop.permute.xlu1 %455  ;;  %v452_v9 = vpop.permute.xlu0 %451  ;;  %1986 = vmatprep.subr.bf16.mxu0 %v2127_v1 }
 0x11f   :  { %vm744_vm4 = vcmp.le.f32.partialorder %v2453_v15, %v456_v8  ;;  %vm743_vm5 = vcmp.le.f32.partialorder %v2453_v15, %v452_v9 }
 0x120   :  { %vm1784_vm6 = vmpackc.low %vm744_vm4, %vm743_vm5 }
 0x121   :  { %2005 = vmatpush3.bf16.msk.msra.mxu1 %vm1784_vm6, %v2130_v28 }
 0x122   :  { %v397_v10 = vpop.permute.xlu1 %396  ;;  %v393_v11 = vpop.permute.xlu0 %392  ;;  %2006 = vmatprep.subr.bf16.mxu1 %v2127_v1 }
 0x123   :  { %vm730_vm7 = vcmp.le.f32.partialorder %v2435_v47, %v397_v10  ;;  %vm729_vm8 = vcmp.le.f32.partialorder %v2435_v47, %v393_v11 }
 0x124   :  { %vm1770_vm9 = vmpackc.low %vm730_vm7, %vm729_vm8 }
 0x125   :  { %1987 = vmatpush3.bf16.msk.msra.mxu0 %vm1770_vm9, %v2130_v28 }
 0x126   :  { %v464_v12 = vpop.permute.xlu1 %463  ;;  %v460_v13 = vpop.permute.xlu0 %459  ;;  %1988 = vmatprep.subr.bf16.mxu0 %v2127_v1 }
 0x127   :  { %vm746_vm10 = vcmp.le.f32.partialorder %v2453_v15, %v464_v12  ;;  %vm745_vm11 = vcmp.le.f32.partialorder %v2453_v15, %v460_v13 }
 0x128   :  { %vm1786_vm12 = vmpackc.low %vm746_vm10, %vm745_vm11 }
 0x129   :  { %2007 = vmatpush3.bf16.msk.msra.mxu1 %vm1786_vm12, %v2130_v28 }
 0x12a   :  { %v405_v14 = vpop.permute.xlu1 %404  ;;  %v401_v17 = vpop.permute.xlu0 %400  ;;  %2008 = vmatprep.subr.bf16.mxu1 %v2127_v1 }
 0x12b   :  { %vm732_vm13 = vcmp.le.f32.partialorder %v2435_v47, %v405_v14  ;;  %vm731_vm14 = vcmp.le.f32.partialorder %v2435_v47, %v401_v17 }
 0x12c   :  { %vm1772_vm15 = vmpackc.low %vm732_vm13, %vm731_vm14 }
 0x12d   :  { %1989 = vmatpush3.bf16.msk.msra.mxu0 %vm1772_vm15, %v2130_v28 }
 0x12e   :  { %v472_v18 = vpop.permute.xlu1 %471  ;;  %v468_v19 = vpop.permute.xlu0 %467  ;;  %1990 = vmatprep.subr.bf16.mxu0 %v2127_v1 }
 0x12f   :  { %vm748_vm1 = vcmp.le.f32.partialorder %v2453_v15, %v472_v18  ;;  %vm747_vm2 = vcmp.le.f32.partialorder %v2453_v15, %v468_v19 }
 0x130   :  { %vm1788_vm3 = vmpackc.low %vm748_vm1, %vm747_vm2 }
 0x131   :  { %2009 = vmatpush3.bf16.msk.msra.mxu1 %vm1788_vm3, %v2130_v28 }
 0x132   :  { %v413_v2 = vpop.permute.xlu1 %412  ;;  %v409_v20 = vpop.permute.xlu0 %408  ;;  %2010 = vmatprep.subr.bf16.mxu1 %v2127_v1 }
 0x133   :  { %vm734_vm4 = vcmp.le.f32.partialorder %v2435_v47, %v413_v2  ;;  %vm733_vm5 = vcmp.le.f32.partialorder %v2435_v47, %v409_v20 }
 0x134   :  { %vm1774_vm6 = vmpackc.low %vm734_vm4, %vm733_vm5 }
 0x135   :  { %1991 = vmatpush3.bf16.msk.msra.mxu0 %vm1774_vm6, %v2130_v28 }
 0x136   :  { %v480_v22 = vpop.permute.xlu1 %479  ;;  %v476_v23 = vpop.permute.xlu0 %475  ;;  %2016 = vmatprep.subr.bf16.mxu0 %v2127_v1 }
 0x137   :  { %vm750_vm7 = vcmp.le.f32.partialorder %v2453_v15, %v480_v22  ;;  %vm749_vm8 = vcmp.le.f32.partialorder %v2453_v15, %v476_v23 }
 0x138   :  { %vm1790_vm9 = vmpackc.low %vm750_vm7, %vm749_vm8  ;;  %1993 = vmatmul.mubr.bf16.vlgmr.msra.gmra.mrb[8].mxu0 %v25_v3 }
 0x139   :  { %2011 = vmatpush3.bf16.msk.msra.mxu1 %vm1790_vm9, %v2130_v28  ;;  %2032 = vmatprep.mubr.msk.bf16.mxu0 %vm2128_vm0, %v2127_v1 }
 0x13a   :  { %v491_v27 = vpop.permute.xlu1 %490  ;;  %v487_v29 = vpop.permute.xlu0 %486  ;;  %2036 = vmatprep.subr.bf16.mxu1 %v2127_v1 }
 0x13b   :  { %vm752_vm10 = vcmp.le.f32.partialorder %v2529_v24, %v491_v27  ;;  %vm751_vm11 = vcmp.le.f32.partialorder %v2529_v24, %v487_v29 }
 0x13c   :  { %vm1792_vm12 = vmpackc.low %vm752_vm10, %vm751_vm11  ;;  %2013 = vmatmul.mubr.bf16.vlgmr.msra.gmra.mrb[8].mxu1 %v26_v26 }
 0x13d   :  { %2017 = vmatpush3.bf16.msk.msra.mxu0 %vm1792_vm12, %v2130_v28  ;;  %2052 = vmatprep.mubr.msk.bf16.mxu1 %vm2128_vm0, %v2127_v1 }
 0x13e   :  { %v558_v31 = vpop.permute.xlu1 %557  ;;  %v554_v32 = vpop.permute.xlu0 %553  ;;  %2018 = vmatprep.subr.bf16.mxu0 %v2127_v1 }
 0x13f   :  { %vm768_vm13 = vcmp.le.f32.partialorder %v2543_v30, %v558_v31  ;;  %vm767_vm14 = vcmp.le.f32.partialorder %v2543_v30, %v554_v32 }
 0x140   :  { %vm1808_vm15 = vmpackc.low %vm768_vm13, %vm767_vm14 }
 0x141   :  { %2037 = vmatpush3.bf16.msk.msra.mxu1 %vm1808_vm15, %v2130_v28 }
 0x142   :  { %v499_v5 = vpop.permute.xlu1 %498  ;;  %v495_v33 = vpop.permute.xlu0 %494  ;;  %2038 = vmatprep.subr.bf16.mxu1 %v2127_v1 }
 0x143   :  { %vm754_vm1 = vcmp.le.f32.partialorder %v2529_v24, %v499_v5  ;;  %vm753_vm2 = vcmp.le.f32.partialorder %v2529_v24, %v495_v33 }
 0x144   :  { %vm1794_vm0 = vmpackc.low %vm754_vm1, %vm753_vm2 }
 0x145   :  { %2019 = vmatpush3.bf16.msk.msra.mxu0 %vm1794_vm0, %v2130_v28 }
 0x146   :  { %v566_v34 = vpop.permute.xlu1 %565  ;;  %v562_v35 = vpop.permute.xlu0 %561  ;;  %2020 = vmatprep.subr.bf16.mxu0 %v2127_v1 }
 0x147   :  { %vm770_vm3 = vcmp.le.f32.partialorder %v2543_v30, %v566_v34  ;;  %vm769_vm4 = vcmp.le.f32.partialorder %v2543_v30, %v562_v35 }
 0x148   :  { %vm1810_vm5 = vmpackc.low %vm770_vm3, %vm769_vm4 }
 0x149   :  { %2039 = vmatpush3.bf16.msk.msra.mxu1 %vm1810_vm5, %v2130_v28 }
 0x14a   :  { %v507_v36 = vpop.permute.xlu1 %506  ;;  %v503_v37 = vpop.permute.xlu0 %502  ;;  %2040 = vmatprep.subr.bf16.mxu1 %v2127_v1 }
 0x14b   :  { %vm756_vm6 = vcmp.le.f32.partialorder %v2529_v24, %v507_v36  ;;  %vm755_vm7 = vcmp.le.f32.partialorder %v2529_v24, %v503_v37 }
 0x14c   :  { %vm1796_vm8 = vmpackc.low %vm756_vm6, %vm755_vm7 }
 0x14d   :  { %2021 = vmatpush3.bf16.msk.msra.mxu0 %vm1796_vm8, %v2130_v28 }
 0x14e   :  { %v574_v38 = vpop.permute.xlu1 %573  ;;  %v570_v39 = vpop.permute.xlu0 %569  ;;  %2022 = vmatprep.subr.bf16.mxu0 %v2127_v1 }
 0x14f   :  { %vm772_vm9 = vcmp.le.f32.partialorder %v2543_v30, %v574_v38  ;;  %vm771_vm10 = vcmp.le.f32.partialorder %v2543_v30, %v570_v39 }
 0x150   :  { %vm1812_vm11 = vmpackc.low %vm772_vm9, %vm771_vm10 }
 0x151   :  { %2041 = vmatpush3.bf16.msk.msra.mxu1 %vm1812_vm11, %v2130_v28 }
 0x152   :  { %v515_v40 = vpop.permute.xlu1 %514  ;;  %v511_v16 = vpop.permute.xlu0 %510  ;;  %2042 = vmatprep.subr.bf16.mxu1 %v2127_v1 }
 0x153   :  { %vm758_vm12 = vcmp.le.f32.partialorder %v2529_v24, %v515_v40  ;;  %vm757_vm13 = vcmp.le.f32.partialorder %v2529_v24, %v511_v16 }
 0x154   :  { %vm1798_vm14 = vmpackc.low %vm758_vm12, %vm757_vm13 }
 0x155   :  { %2023 = vmatpush3.bf16.msk.msra.mxu0 %vm1798_vm14, %v2130_v28 }
 0x156   :  { %v582_v41 = vpop.permute.xlu1 %581  ;;  %v578_v42 = vpop.permute.xlu0 %577  ;;  %2024 = vmatprep.subr.bf16.mxu0 %v2127_v1 }
 0x157   :  { %vm774_vm15 = vcmp.le.f32.partialorder %v2543_v30, %v582_v41  ;;  %vm773_vm1 = vcmp.le.f32.partialorder %v2543_v30, %v578_v42 }
 0x158   :  { %vm1814_vm2 = vmpackc.low %vm774_vm15, %vm773_vm1 }
 0x159   :  { %2043 = vmatpush3.bf16.msk.msra.mxu1 %vm1814_vm2, %v2130_v28 }
 0x15a   :  { %v523_v43 = vpop.permute.xlu1 %522  ;;  %v519_v44 = vpop.permute.xlu0 %518  ;;  %2044 = vmatprep.subr.bf16.mxu1 %v2127_v1 }
 0x15b   :  { %vm760_vm0 = vcmp.le.f32.partialorder %v2529_v24, %v523_v43  ;;  %vm759_vm3 = vcmp.le.f32.partialorder %v2529_v24, %v519_v44 }
 0x15c   :  { %vm1800_vm4 = vmpackc.low %vm760_vm0, %vm759_vm3 }
 0x15d   :  { %2025 = vmatpush3.bf16.msk.msra.mxu0 %vm1800_vm4, %v2130_v28 }
 0x15e   :  { %v590_v45 = vpop.permute.xlu1 %589  ;;  %v586_v46 = vpop.permute.xlu0 %585  ;;  %2026 = vmatprep.subr.bf16.mxu0 %v2127_v1 }
 0x15f   :  { %vm776_vm5 = vcmp.le.f32.partialorder %v2543_v30, %v590_v45  ;;  %vm775_vm6 = vcmp.le.f32.partialorder %v2543_v30, %v586_v46 }
 0x160   :  { %vm1816_vm7 = vmpackc.low %vm776_vm5, %vm775_vm6 }
 0x161   :  { %2045 = vmatpush3.bf16.msk.msra.mxu1 %vm1816_vm7, %v2130_v28 }
 0x162   :  { %v531_v47 = vpop.permute.xlu1 %530  ;;  %v527_v48 = vpop.permute.xlu0 %526  ;;  %2046 = vmatprep.subr.bf16.mxu1 %v2127_v1 }
 0x163   :  { %vm762_vm8 = vcmp.le.f32.partialorder %v2529_v24, %v531_v47  ;;  %vm761_vm9 = vcmp.le.f32.partialorder %v2529_v24, %v527_v48 }
 0x164   :  { %vm1802_vm10 = vmpackc.low %vm762_vm8, %vm761_vm9 }
 0x165   :  { %2027 = vmatpush3.bf16.msk.msra.mxu0 %vm1802_vm10, %v2130_v28  ;;  %vm1504_vm10 = vcmask 1041409  }
 0x166   :  { %v598_v49 = vpop.permute.xlu1 %597  ;;  %v594_v50 = vpop.permute.xlu0 %593  ;;  %2028 = vmatprep.subr.bf16.mxu0 %v2127_v1 }
 0x167   :  { %vm778_vm11 = vcmp.le.f32.partialorder %v2543_v30, %v598_v49  ;;  %vm777_vm12 = vcmp.le.f32.partialorder %v2543_v30, %v594_v50 }
 0x168   :  { %vm1818_vm13 = vmpackc.low %vm778_vm11, %vm777_vm12  ;;  %vm1510_vm11 = vcmask 1043459   ;;  %vm1507_vm12 = vcmask 1042434  }
 0x169   :  { %2047 = vmatpush3.bf16.msk.msra.mxu1 %vm1818_vm13, %v2130_v28  ;;  %vm1513_vm13 = vcmask 1044484  }
 0x16a   :  { %v539_v51 = vpop.permute.xlu1 %538  ;;  %v535_v15 = vpop.permute.xlu0 %534  ;;  %2048 = vmatprep.subr.bf16.mxu1 %v2127_v1 }
 0x16b   :  { %vm764_vm14 = vcmp.le.f32.partialorder %v2529_v24, %v539_v51  ;;  %vm763_vm15 = vcmp.le.f32.partialorder %v2529_v24, %v535_v15 }
 0x16c   :  { %vm1804_vm1 = vmpackc.low %vm764_vm14, %vm763_vm15  ;;  %vm1516_vm14 = vcmask 1045509   ;;  %vm1519_vm15 = vcmask 1046534  }
 0x16d   :  { %2029 = vmatpush3.bf16.msk.msra.mxu0 %vm1804_vm1, %v2130_v28  ;;  %vm1522_vm1 = vcmask 1047559  }
 0x16e   :  { %v606_v52 = vpop.permute.xlu1 %605  ;;  %v602_v53 = vpop.permute.xlu0 %601  ;;  %2030 = vmatprep.subr.bf16.mxu0 %v2127_v1 }
 0x16f   :  { %vm780_vm2 = vcmp.le.f32.partialorder %v2543_v30, %v606_v52  ;;  %vm779_vm0 = vcmp.le.f32.partialorder %v2543_v30, %v602_v53 }
 0x170   :  { %vm1820_vm3 = vmpackc.low %vm780_vm2, %vm779_vm0 }
 0x171   :  { %2049 = vmatpush3.bf16.msk.msra.mxu1 %vm1820_vm3, %v2130_v28 }
 0x172   :  { %v547_v54 = vpop.permute.xlu1 %546  ;;  %v543_v55 = vpop.permute.xlu0 %542  ;;  %2050 = vmatprep.subr.bf16.mxu1 %v2127_v1  ;;  %v28_v1 = vld [vmem:[%s2650_s1 + $0x1c] sm:$0x7]  ;;  %s2131_s1 = smov [#allocation2]  }
 0x173   :  { %vm766_vm4 = vcmp.le.f32.partialorder %v2529_v24, %v547_v54  ;;  %vm765_vm5 = vcmp.le.f32.partialorder %v2529_v24, %v543_v55  ;;  %s1546_s7 = sshll.u32 %s2131_s1, 4  ;;  %s1547_s7 = int_to_ptr.vmem [resolvable:$true] %s1546_s7 }
 0x174   :  { %vm1806_vm6 = vmpackc.low %vm766_vm4, %vm765_vm5  ;;  %s2079_s10 = scalar_lea.vmem %s1547_s7, 128  ;;  %p2084_p1 = scmp.lt.s32.totalorder %s1547_s7, %s1547_s7 }
 0x175   :  { %2031 = vmatpush3.bf16.msk.msra.mxu0 %vm1806_vm6, %v2130_v28  ;;  %p2080_p0 = scmp.ne.s32.totalorder %s1547_s7, %s2079_s10  ;;  %p2085_p2 = scmp.lt.s32.totalorder %s2079_s10, %s2079_s10 }
 0x176   :  { %v614_v57 = vpop.permute.xlu1 %613  ;;  %v610_v58 = vpop.permute.xlu0 %609 }
 0x177   :  { %vm782_vm7 = vcmp.le.f32.partialorder %v2543_v30, %v614_v57  ;;  %vm781_vm8 = vcmp.le.f32.partialorder %v2543_v30, %v610_v58  ;;  %p2086_p3 = por %p2085_p2, %p2084_p1 }
 0x178   :  { %vm1822_vm9 = vmpackc.low %vm782_vm7, %vm781_vm8  ;;  %2033 = vmatmul.mubr.bf16.vlgmr.msra.gmra.mrb[12].mxu0 %v27_v56 }
 0x179   :  { %2051 = vmatpush3.bf16.msk.msra.mxu1 %vm1822_vm9, %v2130_v28  ;;  %p2087_p4 = pnand %p2086_p3, %p2080_p0 }
 0x17c   :  { %2053 = vmatmul.mubr.bf16.vlgmr.msra.gmra.mrb[12].mxu1 %v28_v1 }
 0x18c   :  { %v1137_v59 = vpop.f32.mrb[0].mxu0 }
 0x18d   :  { %v2056_v60 = vtrunc.f32 %v1137_v59  ;;  %v1914_v61 = vpop.f32.mrb[1].mxu0 }
 0x18e   :  { %v1140_v62 = vpop.f32.mrb[2].mxu0 }
 0x18f   :  { %v2057_v63 = vcvt.f32.s32 %v2056_v60  ;;  %v1915_v0 = vpop.f32.mrb[3].mxu0 }
 0x190   :  { %v1177_v4 = vpop.f32.mrb[0].mxu1 }
 0x191   :  { %v1431_v6 = vshll.u32 %v2057_v63, 8  ;;  %v1455_v7 = vshll.u32 %v2057_v63, 16  ;;  %v2058_v8 = vtrunc.f32 %v1177_v4  ;;  %v1934_v9 = vpop.f32.mrb[1].mxu1  ;;  %v1479_v14 = vshll.u32 %v2057_v63, 24 }
 0x192   :  { %v1180_v10 = vpop.f32.mrb[2].mxu1 }
 0x193   :  { %v1439_v11 = vrot.slane %v1431_v6, 1  ;;  %v2059_v12 = vcvt.f32.s32 %v2058_v8  ;;  %v1935_v28 = vpop.f32.mrb[3].mxu1  ;;  %v1463_v13 = vrot.slane %v1455_v7, 2  ;;  %v1487_v22 = vrot.slane %v1479_v14, 3 }
 0x195   :  { %v1447_v17 = vor.u32 %v2057_v63, %v1439_v11  ;;  %v1432_v18 = vshll.u32 %v2059_v12, 8  ;;  %v1456_v19 = vshll.u32 %v2059_v12, 16  ;;  %v1480_v2 = vshll.u32 %v2059_v12, 24 }
 0x197   :  { %v1440_v20 = vrot.slane %v1432_v18, 1  ;;  %v1464_v21 = vrot.slane %v1456_v19, 2  ;;  %v1471_v3 = vor.u32 %v1463_v13, %v1447_v17  ;;  %v1488_v24 = vrot.slane %v1480_v2, 3 }
 0x199   :  { %v1448_v23 = vor.u32 %v2059_v12, %v1440_v20  ;;  %v1495_v27 = vor.u32 %v1487_v22, %v1471_v3 }
 0x19b   :  { %v1472_v25 = vor.u32 %v1464_v21, %v1448_v23  ;;  %v1503_v26 = vrot.slane %v1448_v23, 7 }
 0x19d   :  { %v1496_v29 = vor.u32 %v1488_v24, %v1472_v25  ;;  %v1505_v30 = vsel %vm1504_vm10, %v1503_v26, %v1447_v17 }
 0x19f   :  { %v1525_v31 = vrot.slane %v1496_v29, 7 }
 0x1a1   :  { %v1526_v32 = vsel %vm1510_vm11, %v1525_v31, %v1495_v27 }
 0x1cc   :  { %v1217_v5 = vpop.f32.mrb[4].mxu0 }
 0x1cd   :  { %v2060_v33 = vtrunc.f32 %v1217_v5  ;;  %v1954_v34 = vpop.f32.mrb[5].mxu0 }
 0x1ce   :  { %v1220_v35 = vpop.f32.mrb[6].mxu0 }
 0x1cf   :  { %v2061_v36 = vcvt.f32.s32 %v2060_v33  ;;  %v1955_v37 = vpop.f32.mrb[7].mxu0 }
 0x1d0   :  { %v1257_v38 = vpop.f32.mrb[4].mxu1 }
 0x1d1   :  { %v1433_v39 = vshll.u32 %v2061_v36, 8  ;;  %v1457_v40 = vshll.u32 %v2061_v36, 16  ;;  %v1481_v16 = vshll.u32 %v2061_v36, 24  ;;  %v2062_v41 = vtrunc.f32 %v1257_v38  ;;  %v1974_v42 = vpop.f32.mrb[5].mxu1 }
 0x1d2   :  { %v1260_v43 = vpop.f32.mrb[6].mxu1 }
 0x1d3   :  { %v1441_v44 = vrot.slane %v1433_v39, 1  ;;  %v1465_v45 = vrot.slane %v1457_v40, 2  ;;  %v2063_v46 = vcvt.f32.s32 %v2062_v41  ;;  %v1975_v47 = vpop.f32.mrb[7].mxu1  ;;  %v1489_v48 = vrot.slane %v1481_v16, 3 }
 0x1d5   :  { %v1449_v49 = vor.u32 %v2061_v36, %v1441_v44  ;;  %v1434_v50 = vshll.u32 %v2063_v46, 8  ;;  %v1458_v51 = vshll.u32 %v2063_v46, 16  ;;  %v1482_v15 = vshll.u32 %v2063_v46, 24 }
 0x1d7   :  { %v1473_v52 = vor.u32 %v1465_v45, %v1449_v49  ;;  %v1506_v53 = vrot.slane %v1449_v49, 6  ;;  %v1442_v54 = vrot.slane %v1434_v50, 1  ;;  %v1466_v55 = vrot.slane %v1458_v51, 2 }
 0x1d8   :  { %v1490_v58 = vrot.slane %v1482_v15, 3 }
 0x1d9   :  { %v1497_v56 = vor.u32 %v1489_v48, %v1473_v52  ;;  %v1450_v57 = vor.u32 %v2063_v46, %v1442_v54  ;;  %v1508_v1 = vsel %vm1507_vm12, %v1506_v53, %v1505_v30 }
 0x1db   :  { %v1527_v59 = vrot.slane %v1497_v56, 6  ;;  %v1474_v60 = vor.u32 %v1466_v55, %v1450_v57  ;;  %v1509_v61 = vrot.slane %v1450_v57, 5 }
 0x1dd   :  { %v1498_v62 = vor.u32 %v1490_v58, %v1474_v60  ;;  %v1511_v63 = vsel %vm1510_vm11, %v1509_v61, %v1508_v1  ;;  %v1528_v0 = vsel %vm1513_vm13, %v1527_v59, %v1526_v32 }
 0x1df   :  { %v1529_v4 = vrot.slane %v1498_v62, 5 }
 0x1e1   :  { %v1530_v6 = vsel %vm1516_vm14, %v1529_v4, %v1528_v0 }
 0x20b   :  { %v1297_v7 = vpop.f32.mrb[8].mxu0 }
 0x20c   :  { %v2064_v8 = vtrunc.f32 %v1297_v7  ;;  %v1994_v9 = vpop.f32.mrb[9].mxu0 }
 0x20d   :  { %v1300_v10 = vpop.f32.mrb[10].mxu0 }
 0x20e   :  { %v2065_v11 = vcvt.f32.s32 %v2064_v8  ;;  %v1995_v12 = vpop.f32.mrb[11].mxu0 }
 0x20f   :  { %v1337_v28 = vpop.f32.mrb[8].mxu1 }
 0x210   :  { %v1435_v13 = vshll.u32 %v2065_v11, 8  ;;  %v1459_v14 = vshll.u32 %v2065_v11, 16  ;;  %v1483_v17 = vshll.u32 %v2065_v11, 24  ;;  %v2066_v18 = vtrunc.f32 %v1337_v28  ;;  %v2014_v19 = vpop.f32.mrb[9].mxu1 }
 0x211   :  { %v1340_v2 = vpop.f32.mrb[10].mxu1 }
 0x212   :  { %v1443_v20 = vrot.slane %v1435_v13, 1  ;;  %v1467_v21 = vrot.slane %v1459_v14, 2  ;;  %v2067_v3 = vcvt.f32.s32 %v2066_v18  ;;  %v2015_v22 = vpop.f32.mrb[11].mxu1  ;;  %v1491_v23 = vrot.slane %v1483_v17, 3 }
 0x214   :  { %v1451_v24 = vor.u32 %v2065_v11, %v1443_v20  ;;  %v1436_v25 = vshll.u32 %v2067_v3, 8  ;;  %v1460_v26 = vshll.u32 %v2067_v3, 16  ;;  %v1484_v27 = vshll.u32 %v2067_v3, 24 }
 0x216   :  { %v1475_v29 = vor.u32 %v1467_v21, %v1451_v24  ;;  %v1512_v30 = vrot.slane %v1451_v24, 4  ;;  %v1444_v31 = vrot.slane %v1436_v25, 1  ;;  %v1468_v32 = vrot.slane %v1460_v26, 2 }
 0x217   :  { %v1492_v33 = vrot.slane %v1484_v27, 3 }
 0x218   :  { %v1452_v5 = vor.u32 %v2067_v3, %v1444_v31  ;;  %v1514_v34 = vsel %vm1513_vm13, %v1512_v30, %v1511_v63  ;;  %v1499_v35 = vor.u32 %v1491_v23, %v1475_v29 }
 0x21a   :  { %v1515_v36 = vrot.slane %v1452_v5, 3  ;;  %v1476_v37 = vor.u32 %v1468_v32, %v1452_v5  ;;  %v1531_v38 = vrot.slane %v1499_v35, 4 }
 0x21c   :  { %v1517_v39 = vsel %vm1516_vm14, %v1515_v36, %v1514_v34  ;;  %v1500_v40 = vor.u32 %v1492_v33, %v1476_v37  ;;  %v1532_v16 = vsel %vm1519_vm15, %v1531_v38, %v1530_v6 }
 0x21e   :  { %v1533_v41 = vrot.slane %v1500_v40, 3 }
 0x220   :  { %v1534_v42 = vsel %vm1522_vm1, %v1533_v41, %v1532_v16 }
 0x221   :  { %1538 = vst [vmem:[#allocation4 - $0x2] sm:$0xfc] %v1534_v42 }
 0x24b   :  { %v1377_v43 = vpop.f32.mrb[12].mxu0 }
 0x24c   :  { %v2068_v44 = vtrunc.f32 %v1377_v43  ;;  %v2034_v45 = vpop.f32.mrb[13].mxu0 }
 0x24d   :  { %v1380_v46 = vpop.f32.mrb[14].mxu0 }
 0x24e   :  { %v2069_v47 = vcvt.f32.s32 %v2068_v44  ;;  %v2035_v48 = vpop.f32.mrb[15].mxu0 }
 0x24f   :  { %v1417_v49 = vpop.f32.mrb[12].mxu1 }
 0x250   :  { %v1437_v50 = vshll.u32 %v2069_v47, 8  ;;  %v1461_v51 = vshll.u32 %v2069_v47, 16  ;;  %v2070_v15 = vtrunc.f32 %v1417_v49  ;;  %v2054_v52 = vpop.f32.mrb[13].mxu1  ;;  %v1485_v55 = vshll.u32 %v2069_v47, 24 }
 0x251   :  { %v1420_v53 = vpop.f32.mrb[14].mxu1 }
 0x252   :  { %v1445_v54 = vrot.slane %v1437_v50, 1  ;;  %v2071_v56 = vcvt.f32.s32 %v2070_v15  ;;  %v2055_v57 = vpop.f32.mrb[15].mxu1  ;;  %v1469_v58 = vrot.slane %v1461_v51, 2  ;;  %v1493_v61 = vrot.slane %v1485_v55, 3 }
 0x254   :  { %v1453_v1 = vor.u32 %v2069_v47, %v1445_v54  ;;  %v1438_v59 = vshll.u32 %v2071_v56, 8  ;;  %v1462_v60 = vshll.u32 %v2071_v56, 16  ;;  %v1486_v62 = vshll.u32 %v2071_v56, 24 }
 0x256   :  { %v1446_v63 = vrot.slane %v1438_v59, 1  ;;  %v1518_v0 = vrot.slane %v1453_v1, 2  ;;  %v1477_v4 = vor.u32 %v1469_v58, %v1453_v1  ;;  %v1470_v6 = vrot.slane %v1462_v60, 2 }
 0x257   :  { %v1494_v9 = vrot.slane %v1486_v62, 3 }
 0x258   :  { %v1454_v7 = vor.u32 %v2071_v56, %v1446_v63  ;;  %v1520_v8 = vsel %vm1519_vm15, %v1518_v0, %v1517_v39  ;;  %v1501_v12 = vor.u32 %v1493_v61, %v1477_v4 }
 0x25a   :  { %v1478_v10 = vor.u32 %v1470_v6, %v1454_v7  ;;  %v1521_v11 = vrot.slane %v1454_v7, 1 }
 0x25c   :  { %v1523_v28 = vsel %vm1522_vm1, %v1521_v11, %v1520_v8  ;;  %v1502_v13 = vor.u32 %v1494_v9, %v1478_v10 }
 0x25d   :  { %1524 = vst [vmem:[#allocation2] sm:$0xff] %v1523_v28 }
 0x25e   :  { %2090 = shalt.err (!%p2087_p4)
}
 0x25f   :  { %s2091_s13 = scalar_lea.hbm %s2652_s3, 128 }
 0x260   :  { %p2092_p5 = scmp.ne.s32.totalorder %s2652_s3, %s2091_s13  ;;  %p2095_p6 = scmp.lt.u32.totalorder %s2091_s13, %s2652_s3 }
 0x262   :  { %p2097_p7 = pnand %p2095_p6, %p2092_p5 }
 0x264   :  { %2100 = shalt.err (!%p2097_p7)
}
 0x265   :  { %1549 = dma.vmem_to_hbm [thread:$0]  %s1547_s7, 128, %s2652_s3, [#allocation3]   ;;  %v1535_v14 = vrot.slane %v1501_v12, 2  ;;  %v1536_v17 = vrot.slane %v1502_v13, 1 }
 0x266   :  { %s2101_s18 = scalar_lea.vmem %s1557_s9, 128  ;;  %p2106_p9 = scmp.lt.s32.totalorder %s1557_s9, %s1557_s9 }
 0x267   :  { %v1537_v18 = vsel %vm1504_vm10, %v1536_v17, %v1535_v14  ;;  %p2102_p8 = scmp.ne.s32.totalorder %s1557_s9, %s2101_s18  ;;  %p2107_p10 = scmp.lt.s32.totalorder %s2101_s18, %s2101_s18 }
 0x268   :  { %1539 = vst [vmem:[#allocation4 + $0x6] sm:$0x3] %v1537_v18 }
 0x269   :  { %p2108_p11 = por %p2107_p10, %p2106_p9 }
 0x26b   :  { %p2109_p12 = pnand %p2108_p11, %p2102_p8 }
 0x26d   :  { %2112 = shalt.err (!%p2109_p12)
}
 0x26e   :  { %s2113_s21 = scalar_lea.hbm %s2653_s4, 128 }
 0x26f   :  { %p2114_p13 = scmp.ne.s32.totalorder %s2653_s4, %s2113_s21  ;;  %p2117_p0 = scmp.lt.u32.totalorder %s2113_s21, %s2653_s4 }
 0x271   :  { %p2119_p1 = pnand %p2117_p0, %p2114_p13 }
 0x273   :  { %2122 = shalt.err (!%p2119_p1)
}
 0x274   :  { %1559 = dma.vmem_to_hbm [thread:$0]  %s1557_s9, 128, %s2653_s4, [#allocation5]  }
 0x275   :  { %2123 = dma.done.wait [#allocation3], 128  }
 0x276   :  { %2124 = vsyncadd [#allocation3], 4294967168 }
 0x277   :  { %2125 = dma.done.wait [#allocation5], 128  }
 0x278   :  { %2126 = vsyncadd [#allocation5], 4294967168 }
 0x279   :  { %1566 = vsyncpa [#allocation3], 1 }
 0x27a   :  { %1567 = vsyncpa [#allocation5], 1 }

</bundles_post_ra>
